<compile_context>
chip_gen: v7x
topology: tpu7x:2x2x1
jax: 0.10.0
libtpu: 0.0.40
codegen_flags: <defaults>
</compile_context>

<pallas_src>
import jax
import jax.numpy as jnp
import numpy as np
from jax.experimental import pallas as pl
from jax.experimental.pallas import tpu as pltpu

LN_EPS = 1e-5

_VMEM_LIMIT_BYTES = 48 * 1024 * 1024   # > default scoped limit, < v7x 64 MiB phys
_VMEM_BUDGET_BYTES = 36 * 1024 * 1024  # what the tile heuristic may consume


def _round_up(v, m):
    return (v + m - 1) // m * m


def _patch_merging_kernel(xa_ref, xb_ref, wa_ref, wb_ref, b_ref, o_ref):
    # xa_ref/xb_ref: (th, W2, 2C)  merged rows for s1=0 / s1=1 (lane = s2*C + c)
    # wa_ref/wb_ref: (2C, C2p)     LN-affine-folded, channel-permuted weight halves
    # b_ref:         (1, C2p)      beta @ W.T (zero-padded)
    # o_ref:         (th, W2, C2p)
    xa = xa_ref[...].astype(jnp.float32)
    xb = xb_ref[...].astype(jnp.float32)
    inv_c4 = 1.0 / float(xa.shape[-1] + xb.shape[-1])

    # LayerNorm statistics over the full 4C group, computed from the two halves
    # (order-independent, so no lane concat is needed).
    mean = (jnp.sum(xa, axis=-1, keepdims=True)
            + jnp.sum(xb, axis=-1, keepdims=True)) * inv_c4
    xac = xa - mean
    xbc = xb - mean
    var = (jnp.sum(xac * xac, axis=-1, keepdims=True)
           + jnp.sum(xbc * xbc, axis=-1, keepdims=True)) * inv_c4
    inv_std = jax.lax.rsqrt(var + LN_EPS)

    # Feed the MXU in the weight dtype (bf16 stays bf16); stats stay f32.
    xan = (xac * inv_std).astype(wa_ref.dtype)
    xbn = (xbc * inv_std).astype(wb_ref.dtype)

    th, w2, c2 = xan.shape
    a2 = xan.reshape(th * w2, c2)
    b2 = xbn.reshape(th * w2, c2)
    y = jnp.dot(a2, wa_ref[...], preferred_element_type=jnp.float32)
    y = y + jnp.dot(b2, wb_ref[...], preferred_element_type=jnp.float32)
    y = y + b_ref[...].astype(jnp.float32)
    o_ref[...] = y.reshape(th, w2, -1).astype(o_ref.dtype)


def _choose_row_tile(H2, W2, C, x_itemsize, w_itemsize, out_itemsize):
    """Pick how many H/2 rows to process per grid step within the VMEM budget."""
    C2 = 2 * C
    C2p = _round_up(C2, 128)
    C4 = 4 * C
    # constants (weights + bias), assume double-buffered worst case
    fixed = 2 * (C4 * C2p + C2p) * w_itemsize
    # double-buffered activations per H/2 row of the tile (2 input views + out)
    per_row = 2 * W2 * (2 * C2 * x_itemsize + C2p * out_itemsize)
    th = (_VMEM_BUDGET_BYTES - fixed) // max(per_row, 1)
    # ~2048 merged rows per tile is well past the HBM-roofline knee.
    th = min(th, pl.cdiv(2048, W2))
    th = max(th, 1)
    th = min(th, H2)
    return int(th)


def patch_merging(x, gamma, beta, weight, *, row_tile=None):
    """SwinUNet PatchMerging forward.

    x: (B, H, W, C) channels-last.  gamma/beta: (4C,) LayerNorm affine.
    weight: (2C, 4C) torch nn.Linear weight (bias=False).
    Returns (B, H//2, W//2, 2C), matching PatchMerging.forward.
    """
    B, H, W, C = x.shape
    assert H % 2 == 0 and W % 2 == 0, "H and W must be even"
    H2, W2 = H // 2, W // 2
    C2, C4 = 2 * C, 4 * C
    C2p = _round_up(C2, 128)

    # ---- one-off parameter folding (tiny O(4C*2C) transforms) --------------
    w_t = weight.T.astype(jnp.float32)                 # (4C, 2C), y = x @ w_t
    w_fold = gamma.astype(jnp.float32)[:, None] * w_t  # fold LN scale
    b_fold = beta.astype(jnp.float32) @ w_t            # fold LN shift -> (2C,)

    # Kernel channel order is (s1, s2, c); PyTorch flatten order is (s2, s1, c).
    j = np.arange(C4)
    s1, rem = j // C2, j % C2
    s2, c = rem // C, rem % C
    perm = s2 * C2 + s1 * C + c
    w_k = w_fold[perm, :]                              # reindex input channels

    pad = C2p - C2
    w_k = jnp.pad(w_k, ((0, 0), (0, pad))).astype(weight.dtype)
    b_k = jnp.pad(b_fold, (0, pad)).reshape(1, C2p).astype(jnp.float32)
    wa, wb = w_k[:C2], w_k[C2:]

    # ---- fused gather: free reshape, two s1-pinned views --------------------
    x5 = x.reshape(B, H2, 2, W2, C2)                   # lane index = s2*C + c

    th = row_tile if row_tile is not None else _choose_row_tile(
        H2, W2, C, x.dtype.itemsize, w_k.dtype.itemsize, x.dtype.itemsize)
    th = max(1, min(int(th), H2))
    grid = (B, pl.cdiv(H2, th))

    out = pl.pallas_call(
        _patch_merging_kernel,
        out_shape=jax.ShapeDtypeStruct((B, H2, W2, C2p), x.dtype),
        grid_spec=pltpu.PrefetchScalarGridSpec(
            num_scalar_prefetch=0,
            grid=grid,
            in_specs=[
                pl.BlockSpec((None, th, None, W2, C2),
                             lambda b, i: (b, i, 0, 0, 0)),   # s1 = 0 rows
                pl.BlockSpec((None, th, None, W2, C2),
                             lambda b, i: (b, i, 1, 0, 0)),   # s1 = 1 rows
                pl.BlockSpec((C2, C2p), lambda b, i: (0, 0)),
                pl.BlockSpec((C2, C2p), lambda b, i: (0, 0)),
                pl.BlockSpec((1, C2p), lambda b, i: (0, 0)),
            ],
            out_specs=pl.BlockSpec((None, th, W2, C2p),
                                   lambda b, i: (b, i, 0, 0)),
        ),
        compiler_params=pltpu.CompilerParams(
            dimension_semantics=("parallel", "parallel"),
            vmem_limit_bytes=_VMEM_LIMIT_BYTES),
    )(x5, x5, wa, wb, b_k)

    return out[..., :C2]


def _reference(x, gamma, beta, weight):
    """Plain-JAX PatchMerging reference (algebraically identical to
    norm -> reduction; the LN affine is folded into the weight so the
    comparison is independent of backend matmul operand rounding)."""
    B, H, W, C = x.shape
    xr = x.reshape(B, H // 2, 2, W // 2, 2, C)
    xr = jnp.transpose(xr, (0, 1, 3, 4, 2, 5)).reshape(B, H // 2, W // 2, 4 * C)
    mean = jnp.mean(xr, axis=-1, keepdims=True)
    var = jnp.mean((xr - mean) ** 2, axis=-1, keepdims=True)
    xn = (xr - mean) * jax.lax.rsqrt(var + LN_EPS)
    w_fold = gamma[:, None] * weight.T
    b_fold = beta @ weight.T
    return xn @ w_fold + b_fold


if __name__ == "__main__":
    key = jax.random.PRNGKey(0)
    B, H, W, dim = 2, 16, 16, 32          # input channels C = dim
    k1, k2, k3, k4 = jax.random.split(key, 4)

    x = jax.random.normal(k1, (B, H, W, dim), dtype=jnp.float32)

    # Synthetic parameters (shapes from PatchMerging.__init__):
    #   norm:      LayerNorm(4*dim)                 -> gamma/beta (4*dim,)
    #   reduction: Linear(4*dim, 2*dim, bias=False) -> weight (2*dim, 4*dim)
    gamma = 1.0 + 0.1 * jax.random.normal(k2, (4 * dim,), dtype=jnp.float32)
    beta = 0.1 * jax.random.normal(k3, (4 * dim,), dtype=jnp.float32)
    weight = (jax.random.normal(k4, (2 * dim, 4 * dim), dtype=jnp.float32)
              / jnp.sqrt(4.0 * dim))

    out = jax.jit(patch_merging)(x, gamma, beta, weight)
    out = jax.block_until_ready(out)

    ref = _reference(x, gamma, beta, weight)
    assert out.shape == (B, H // 2, W // 2, 2 * dim), out.shape
    assert jnp.allclose(out, ref, atol=2e-3, rtol=2e-3), (
        float(jnp.max(jnp.abs(out - ref))))

    print("KERNEL_OK")
</pallas_src>

<mosaic_0001>
module attributes {stable_mosaic.version = 11 : i64} {
  func.func @_patch_merging_kernel(%arg0: i32, %arg1: i32, %arg2: memref<1x8x1x8x64xf32, #tpu.memory_space<vmem>>, %arg3: memref<1x8x1x8x64xf32, #tpu.memory_space<vmem>>, %arg4: memref<64x128xf32, #tpu.memory_space<vmem>>, %arg5: memref<64x128xf32, #tpu.memory_space<vmem>>, %arg6: memref<1x128xf32, #tpu.memory_space<vmem>>, %arg7: memref<1x8x8x128xf32, #tpu.memory_space<vmem>>) attributes {dimension_semantics = [#tpu.dimension_semantics<parallel>, #tpu.dimension_semantics<parallel>], iteration_bounds = array<i64: 2, 1>, scalar_prefetch = 0 : i64, scratch_operands = 0 : i64, tpu.core_type = #tpu.core_type<tc>, window_params = [{transform_indices = @transform_0, window_bounds = array<i64: 1, 8, 1, 8, 64>}, {transform_indices = @transform_1, window_bounds = array<i64: 1, 8, 1, 8, 64>}, {pipeline_mode = #tpu.pipeline_mode<synchronous>, transform_indices = @transform_2, window_bounds = array<i64: 64, 128>}, {pipeline_mode = #tpu.pipeline_mode<synchronous>, transform_indices = @transform_3, window_bounds = array<i64: 64, 128>}, {pipeline_mode = #tpu.pipeline_mode<synchronous>, transform_indices = @transform_4, window_bounds = array<i64: 1, 128>}, {transform_indices = @transform_5, window_bounds = array<i64: 1, 8, 8, 128>}]} {
    %c0 = arith.constant 0 : index
    %c0_0 = arith.constant 0 : index
    %c0_1 = arith.constant 0 : index
    %c0_2 = arith.constant 0 : index
    %c0_3 = arith.constant 0 : index
    %0 = vector.load %arg2[%c0, %c0_0, %c0_1, %c0_2, %c0_3] : memref<1x8x1x8x64xf32, #tpu.memory_space<vmem>>, vector<1x8x1x8x64xf32>
    %1 = vector.shape_cast %0 : vector<1x8x1x8x64xf32> to vector<8x8x64xf32>
    %c0_4 = arith.constant 0 : index
    %c0_5 = arith.constant 0 : index
    %c0_6 = arith.constant 0 : index
    %c0_7 = arith.constant 0 : index
    %c0_8 = arith.constant 0 : index
    %2 = vector.load %arg3[%c0_4, %c0_5, %c0_6, %c0_7, %c0_8] : memref<1x8x1x8x64xf32, #tpu.memory_space<vmem>>, vector<1x8x1x8x64xf32>
    %3 = vector.shape_cast %2 : vector<1x8x1x8x64xf32> to vector<8x8x64xf32>
    %cst = arith.constant dense<0.000000e+00> : vector<8x8xf32>
    %4 = vector.multi_reduction <add>, %1, %cst [2] : vector<8x8x64xf32> to vector<8x8xf32>
    %5 = vector.shape_cast %4 : vector<8x8xf32> to vector<8x8x1xf32>
    %cst_9 = arith.constant dense<0.000000e+00> : vector<8x8xf32>
    %6 = vector.multi_reduction <add>, %3, %cst_9 [2] : vector<8x8x64xf32> to vector<8x8xf32>
    %7 = vector.shape_cast %6 : vector<8x8xf32> to vector<8x8x1xf32>
    %8 = arith.addf %5, %7 : vector<8x8x1xf32>
    %cst_10 = arith.constant 7.812500e-03 : f32
    %9 = vector.broadcast %cst_10 : f32 to vector<8x8x1xf32>
    %10 = arith.mulf %8, %9 : vector<8x8x1xf32>
    %11 = vector.broadcast %10 : vector<8x8x1xf32> to vector<8x8x64xf32>
    %12 = arith.subf %1, %11 : vector<8x8x64xf32>
    %13 = vector.broadcast %10 : vector<8x8x1xf32> to vector<8x8x64xf32>
    %14 = arith.subf %3, %13 : vector<8x8x64xf32>
    %15 = arith.mulf %12, %12 : vector<8x8x64xf32>
    %cst_11 = arith.constant dense<0.000000e+00> : vector<8x8xf32>
    %16 = vector.multi_reduction <add>, %15, %cst_11 [2] : vector<8x8x64xf32> to vector<8x8xf32>
    %17 = vector.shape_cast %16 : vector<8x8xf32> to vector<8x8x1xf32>
    %18 = arith.mulf %14, %14 : vector<8x8x64xf32>
    %cst_12 = arith.constant dense<0.000000e+00> : vector<8x8xf32>
    %19 = vector.multi_reduction <add>, %18, %cst_12 [2] : vector<8x8x64xf32> to vector<8x8xf32>
    %20 = vector.shape_cast %19 : vector<8x8xf32> to vector<8x8x1xf32>
    %21 = arith.addf %17, %20 : vector<8x8x1xf32>
    %cst_13 = arith.constant 7.812500e-03 : f32
    %22 = vector.broadcast %cst_13 : f32 to vector<8x8x1xf32>
    %23 = arith.mulf %21, %22 : vector<8x8x1xf32>
    %cst_14 = arith.constant 9.99999974E-6 : f32
    %24 = vector.broadcast %cst_14 : f32 to vector<8x8x1xf32>
    %25 = arith.addf %23, %24 : vector<8x8x1xf32>
    %26 = math.rsqrt %25 : vector<8x8x1xf32>
    %27 = vector.broadcast %26 : vector<8x8x1xf32> to vector<8x8x64xf32>
    %28 = arith.mulf %12, %27 : vector<8x8x64xf32>
    %29 = vector.broadcast %26 : vector<8x8x1xf32> to vector<8x8x64xf32>
    %30 = arith.mulf %14, %29 : vector<8x8x64xf32>
    %31 = vector.shape_cast %28 : vector<8x8x64xf32> to vector<64x64xf32>
    %32 = vector.shape_cast %30 : vector<8x8x64xf32> to vector<64x64xf32>
    %c0_15 = arith.constant 0 : index
    %c0_16 = arith.constant 0 : index
    %33 = vector.load %arg4[%c0_15, %c0_16] : memref<64x128xf32, #tpu.memory_space<vmem>>, vector<64x128xf32>
    %cst_17 = arith.constant dense<0.000000e+00> : vector<64x128xf32>
    %34 = tpu.matmul %31, %33, %cst_17 {dimension_numbers = #tpu.dot_dimension_numbers<[1], [0], [0], [1], [0, 0, 1, 1], [], []>} : vector<64x64xf32>, vector<64x128xf32>, vector<64x128xf32> -> vector<64x128xf32>
    %c0_18 = arith.constant 0 : index
    %c0_19 = arith.constant 0 : index
    %35 = vector.load %arg5[%c0_18, %c0_19] : memref<64x128xf32, #tpu.memory_space<vmem>>, vector<64x128xf32>
    %cst_20 = arith.constant dense<0.000000e+00> : vector<64x128xf32>
    %36 = tpu.matmul %32, %35, %cst_20 {dimension_numbers = #tpu.dot_dimension_numbers<[1], [0], [0], [1], [0, 0, 1, 1], [], []>} : vector<64x64xf32>, vector<64x128xf32>, vector<64x128xf32> -> vector<64x128xf32>
    %37 = arith.addf %34, %36 : vector<64x128xf32>
    %c0_21 = arith.constant 0 : index
    %c0_22 = arith.constant 0 : index
    %38 = vector.load %arg6[%c0_21, %c0_22] : memref<1x128xf32, #tpu.memory_space<vmem>>, vector<1x128xf32>
    %39 = vector.broadcast %38 : vector<1x128xf32> to vector<64x128xf32>
    %40 = arith.addf %37, %39 : vector<64x128xf32>
    %41 = vector.shape_cast %40 : vector<64x128xf32> to vector<8x8x128xf32>
    %c0_23 = arith.constant 0 : index
    %c0_24 = arith.constant 0 : index
    %c0_25 = arith.constant 0 : index
    %c0_26 = arith.constant 0 : index
    %42 = vector.load %arg7[%c0_23, %c0_24, %c0_25, %c0_26] : memref<1x8x8x128xf32, #tpu.memory_space<vmem>>, vector<1x8x8x128xf32>
    %43 = vector.shape_cast %42 : vector<1x8x8x128xf32> to vector<8x8x128xf32>
    %44 = vector.shape_cast %41 : vector<8x8x128xf32> to vector<1x8x8x128xf32>
    tpu.vector_store %arg7[%c0_23, %c0_24, %c0_25, %c0_26], %44 {strides = array<i32>} : memref<1x8x8x128xf32, #tpu.memory_space<vmem>>, vector<1x8x8x128xf32>,
    return
  }
  func.func @transform_0(%arg0: i32, %arg1: i32) -> (i32, i32, i32, i32, i32) {
    %c0_i32 = arith.constant 0 : i32
    %c0_i32_0 = arith.constant 0 : i32
    %c0_i32_1 = arith.constant 0 : i32
    %c0_i32_2 = arith.constant 0 : i32
    return %arg0, %arg1, %c0_i32, %c0_i32_0, %c0_i32_1 : i32, i32, i32, i32, i32
  }
  func.func @transform_1(%arg0: i32, %arg1: i32) -> (i32, i32, i32, i32, i32) {
    %c1_i32 = arith.constant 1 : i32
    %c0_i32 = arith.constant 0 : i32
    %c0_i32_0 = arith.constant 0 : i32
    %c0_i32_1 = arith.constant 0 : i32
    return %arg0, %arg1, %c1_i32, %c0_i32, %c0_i32_0 : i32, i32, i32, i32, i32
  }
  func.func @transform_2(%arg0: i32, %arg1: i32) -> (i32, i32) {
    %c0_i32 = arith.constant 0 : i32
    %c0_i32_0 = arith.constant 0 : i32
    %c0_i32_1 = arith.constant 0 : i32
    return %c0_i32, %c0_i32_0 : i32, i32
  }
  func.func @transform_3(%arg0: i32, %arg1: i32) -> (i32, i32) {
    %c0_i32 = arith.constant 0 : i32
    %c0_i32_0 = arith.constant 0 : i32
    %c0_i32_1 = arith.constant 0 : i32
    return %c0_i32, %c0_i32_0 : i32, i32
  }
  func.func @transform_4(%arg0: i32, %arg1: i32) -> (i32, i32) {
    %c0_i32 = arith.constant 0 : i32
    %c0_i32_0 = arith.constant 0 : i32
    %c0_i32_1 = arith.constant 0 : i32
    return %c0_i32, %c0_i32_0 : i32, i32
  }
  func.func @transform_5(%arg0: i32, %arg1: i32) -> (i32, i32, i32, i32) {
    %c0_i32 = arith.constant 0 : i32
    %c0_i32_0 = arith.constant 0 : i32
    %c0_i32_1 = arith.constant 0 : i32
    return %arg0, %arg1, %c0_i32, %c0_i32_0 : i32, i32, i32, i32
  }
}

</mosaic_0001>

<bundles_post_ra>
// kernel: patch_merging.1
= control target key start
LH: loop header
LB: loop body
LE: loop exit
PB: predicated region body
PF: predicated region fallthrough
CT: control target
= control target key end

     0   :  { %10 = vsyncpa [#allocation5], 0  ;;  %s1780_s0 = inlined_call_operand.vmem [shape: f32[2,8,2,8,64], index: 0, kind: input, shape index: {}, may-alias: {0,1}]   ;;  %s1781_s1 = inlined_call_operand.vmem [shape: f32[2,8,2,8,64], index: 1, kind: input, shape index: {}, may-alias: {0,1}]   ;;  %s1782_s2 = inlined_call_operand.vmem [shape: f32[64,128], index: 2, kind: input, shape index: {}]   ;;  %s1783_s3 = inlined_call_operand.vmem [shape: f32[64,128], index: 3, kind: input, shape index: {}]   ;;  %s1784_s4 = inlined_call_operand.vmem [shape: f32[1,128], index: 4, kind: input, shape index: {}]   ;;  %s1785_s5 = inlined_call_operand.hbm [shape: f32[2,8,8,128], index: 5, kind: output, shape index: {}]  }
   0x1   :  { %12 = vsyncpa [#allocation5 + $0x1], 0  ;;  %s1384_s18 = smov 0   ;;  %s1386_s19 = smov 0  }
   0x2   :  { %s1388_s20 = smov 0   ;;  %s1390_s21 = smov 0  }
   0x3   :  { %s1392_s22 = smov 0   ;;  %s1394_s23 = smov 0  }
   0x4 LB: > { %s1023_s24 = sadd.s32 4294967295, %s1349_s23   ;;  %s1024_s25 = sadd.s32 4294967294, %s1349_s23   ;;  %s1349_s23 = sphi %s1394_s23, %s18_s23   ;;  %s1345_s22 = sphi %s1392_s22, %s1793_s22   ;;  %s1341_s21 = sphi %s1390_s21, %s1792_s21   ;;  %s1337_s20 = sphi %s1388_s20, %s1791_s20   ;;  %s1333_s19 = sphi %s1386_s19, %s1790_s19   ;;  %s1329_s18 = sphi %s1384_s18, %s1789_s18  }
   0x5   : > { %s30_s26 = sadd.s32 1, %s1345_s22  ;;  %s39_s27 = sadd.s32 1, %s1337_s20 }
   0x6   : > { %p32_p0 = scmp.ge.s32.totalorder %s30_s26, 2  ;;  %p46_p1 = scmp.ne.s32.totalorder %s1337_s20, %s1333_s19 }
   0x7   : > { %p47_p2 = scmp.eq.s32.totalorder %s1349_s23, 0  ;;  %p169_p3 = scmp.eq.s32.totalorder %s1023_s24, 1 }
   0x8   : > { %s1795_s26 = smov (%p32_p0, %s30_s26), 0  ;;  %p174_p6 = scmp.ne.s32.totalorder %s1333_s19, %s1329_s18 }
   0x9   : > { %p1423_p4 = por %p47_p2, %p46_p1  ;;  %p1427_p5 = por %p169_p3, %p46_p1 }
   0xa   : > { %s34_s30 = ssub.s32 %s1345_s22, %s1795_s26  ;;  %p175_p8 = scmp.eq.s32.totalorder %s1024_s25, 1 }
   0xb   : > { %p37_p7 = scmp.eq.s32.totalorder %s34_s30, 0  ;;  %p1026_p10 = scmp.ge.s32.totalorder %s1349_s23, 2 }
   0xc   : > { %p1438_p9 = por %p175_p8, %p174_p6 }
   0xd   : > { %s1436_s6 = scalar_select %p37_p7, %s1337_s20, %s39_s27  }
   0xe   : > { %200 = sbr.rel (%p1026_p10) target bundleno = 37 (0x25), region = 28 }
  0x15   : > { %203 = sbr.rel (!%p1423_p4) target bundleno = 29 (0x1d), region = 32  ;;  %s205_s8 = sand.u32 (%p1423_p4), 1, %s1337_s20  }
  0x16   : > { %s1067_s9 = sshll.u32 (%p1423_p4), %s1345_s22, 7  ;;  %s1027_s10 = sshll.u32 (%p1423_p4), %s205_s8, 6 }
  0x17   : > { %s213_s13 = scalar_lea.vmem (%p1423_p4), %s1780_s0, %s1067_s9  ;;  %s207_s14 = scalar_lea.vmem (%p1423_p4), [#allocation2], %s1027_s10 }
  0x18   : > { %v255_v0 = vld [vmem:[%s213_s13] sm:$0xff] (%p1423_p4)  ;;  %v257_v1 = vld [vmem:[%s213_s13 + $0x10] sm:$0xff] (%p1423_p4) }
  0x19   : > { %v259_v2 = vld [vmem:[%s213_s13 + $0x20] sm:$0xff] (%p1423_p4)  ;;  %256 = vst [vmem:[%s207_s14] sm:$0xff] (%p1423_p4), %v255_v0  ;;  %258 = vst [vmem:[%s207_s14 + $0x8] sm:$0xff] (%p1423_p4), %v257_v1  ;;  %v261_v3 = vld [vmem:[%s213_s13 + $0x30] sm:$0xff] (%p1423_p4) }
  0x1a   : > { %260 = vst [vmem:[%s207_s14 + $0x10] sm:$0xff] (%p1423_p4), %v259_v2  ;;  %v263_v4 = vld [vmem:[%s213_s13 + $0x40] sm:$0xff] (%p1423_p4)  ;;  %v265_v5 = vld [vmem:[%s213_s13 + $0x50] sm:$0xff] (%p1423_p4)  ;;  %262 = vst [vmem:[%s207_s14 + $0x18] sm:$0xff] (%p1423_p4), %v261_v3 }
  0x1b   : > { %264 = vst [vmem:[%s207_s14 + $0x20] sm:$0xff] (%p1423_p4), %v263_v4  ;;  %266 = vst [vmem:[%s207_s14 + $0x28] sm:$0xff] (%p1423_p4), %v265_v5  ;;  %v267_v6 = vld [vmem:[%s213_s13 + $0x60] sm:$0xff] (%p1423_p4)  ;;  %v269_v7 = vld [vmem:[%s213_s13 + $0x70] sm:$0xff] (%p1423_p4) }
  0x1c   : > { %268 = vst [vmem:[%s207_s14 + $0x30] sm:$0xff] %v267_v6  ;;  %270 = vst [vmem:[%s207_s14 + $0x38] sm:$0xff] %v269_v7 }
  0x1d PF: > { %276 = sbr.rel (!%p1423_p4) target bundleno = 37 (0x25), region = 70  ;;  %s278_s15 = sand.u32 (%p1423_p4), 1, %s1337_s20  }
  0x1e   : > { %s1068_s16 = sshll.u32 (%p1423_p4), %s1345_s22, 7  ;;  %s1030_s17 = sshll.u32 (%p1423_p4), %s278_s15, 6 }
  0x1f   : > { %s956_s27 = scalar_lea.vmem (%p1423_p4), %s1781_s1, %s1068_s16  ;;  %s280_s30 = scalar_lea.vmem (%p1423_p4), [#allocation3], %s1030_s17 }
  0x20   : > { %v1033_v8 = vld [vmem:[%s956_s27 + $0x8] sm:$0xff] (%p1423_p4)  ;;  %v1034_v9 = vld [vmem:[%s956_s27 + $0x18] sm:$0xff] (%p1423_p4) }
  0x21   : > { %v1035_v10 = vld [vmem:[%s956_s27 + $0x28] sm:$0xff] (%p1423_p4)  ;;  %330 = vst [vmem:[%s280_s30] sm:$0xff] (%p1423_p4), %v1033_v8  ;;  %332 = vst [vmem:[%s280_s30 + $0x8] sm:$0xff] (%p1423_p4), %v1034_v9  ;;  %v1036_v11 = vld [vmem:[%s956_s27 + $0x38] sm:$0xff] (%p1423_p4) }
  0x22   : > { %334 = vst [vmem:[%s280_s30 + $0x10] sm:$0xff] (%p1423_p4), %v1035_v10  ;;  %v1037_v12 = vld [vmem:[%s956_s27 + $0x48] sm:$0xff] (%p1423_p4)  ;;  %v1038_v13 = vld [vmem:[%s956_s27 + $0x58] sm:$0xff] (%p1423_p4)  ;;  %336 = vst [vmem:[%s280_s30 + $0x18] sm:$0xff] (%p1423_p4), %v1036_v11 }
  0x23   : > { %338 = vst [vmem:[%s280_s30 + $0x20] sm:$0xff] (%p1423_p4), %v1037_v12  ;;  %340 = vst [vmem:[%s280_s30 + $0x28] sm:$0xff] (%p1423_p4), %v1038_v13  ;;  %v1039_v14 = vld [vmem:[%s956_s27 + $0x68] sm:$0xff] (%p1423_p4)  ;;  %v1040_v15 = vld [vmem:[%s956_s27 + $0x78] sm:$0xff] (%p1423_p4) }
  0x24   : > { %342 = vst [vmem:[%s280_s30 + $0x30] sm:$0xff] %v1039_v14  ;;  %344 = vst [vmem:[%s280_s30 + $0x38] sm:$0xff] %v1040_v15 }
  0x25 PF: > { %p1041_p11 = scmp.ge.s32.totalorder %s1349_s23, 1  ;;  %p349_p12 = scmp.lt.s32.totalorder %s1349_s23, 3 }
  0x27   : > { %p350_p13 = pnand %p1041_p11, %p349_p12 }
  0x28   : > { %s356_s28 = sand.u32 (!%p350_p13), 1, %s1333_s19   ;;  %vm413_vm0 = vcmask (!%p350_p13), 523264   ;;  %s1069_s27 = sshll.u32 (!%p350_p13), %s1341_s21, 10 }
  0x29   : > { %353 = sbr.rel (%p350_p13) target bundleno = 621 (0x26d), region = 108  ;;  %s1464_s8 = sshll.u32 (!%p350_p13), %s356_s28, 6 }
  0x2a   : > { %s1467_s9 = scalar_lea.vmem (!%p350_p13), [#allocation2], %s1464_s8  ;;  %s1474_s10 = scalar_lea.vmem (!%p350_p13), [#allocation3], %s1464_s8 }
  0x2b   : > { %v398_v16 = vld [vmem:[%s1467_s9 + $0x8] sm:$0xff] (!%p350_p13)  ;;  %v397_v17 = vld [vmem:[%s1467_s9] sm:$0xff] (!%p350_p13)  ;;  %v1481_v24 = vld [vmem:[%s1474_s10 + $0x10] sm:$0xff] (!%p350_p13)  ;;  %s1712_s25 = scalar_lea.vmem (!%p350_p13), [#allocation4], %s1464_s8  ;;  %s1733_s21 = scalar_lea.sflag (!%p350_p13), [#allocation5], %s356_s28 }
  0x2c   : > { %v417_v18 = vsel (!%p350_p13), %vm413_vm0, %v398_v16, 0.0  ;;  %v414_v19 = vsel (!%p350_p13), %vm413_vm0, %v397_v17, 0.0  ;;  %v406_v20 = vld [vmem:[%s1474_s10 + $0x8] sm:$0xff] (!%p350_p13)  ;;  %v405_v21 = vld [vmem:[%s1474_s10] sm:$0xff] (!%p350_p13)  ;;  %v399_v25 = vld [vmem:[%s1467_s9 + $0x10] sm:$0xff] (!%p350_p13)  ;;  %v444_v26 = vsel (!%p350_p13), %vm413_vm0, %v1481_v24, 0.0 }
  0x2d   : > { %418 = vadd.xlane.f32.xlu1 (!%p350_p13), %v417_v18  ;;  %415 = vadd.xlane.f32.xlu0 (!%p350_p13), %v414_v19  ;;  %v441_v22 = vsel (!%p350_p13), %vm413_vm0, %v406_v20, 0.0  ;;  %v438_v23 = vsel (!%p350_p13), %vm413_vm0, %v405_v21, 0.0  ;;  %v420_v27 = vsel (!%p350_p13), %vm413_vm0, %v399_v25, 0.0  ;;  %v1488_v28 = vld [vmem:[%s1474_s10 + $0x18] sm:$0xff] (!%p350_p13)  ;;  %v1498_v32 = vld [vmem:[%s1474_s10 + $0x20] sm:$0xff] (!%p350_p13)  ;;  %v1508_v36 = vld [vmem:[%s1474_s10 + $0x28] sm:$0xff] (!%p350_p13) }
  0x2e   : > { %v1491_v29 = vld [vmem:[%s1467_s9 + $0x18] sm:$0xff] (!%p350_p13)  ;;  %v447_v30 = vsel (!%p350_p13), %vm413_vm0, %v1488_v28, 0.0  ;;  %v1501_v33 = vld [vmem:[%s1467_s9 + $0x20] sm:$0xff] (!%p350_p13)  ;;  %v450_v34 = vsel (!%p350_p13), %vm413_vm0, %v1498_v32, 0.0  ;;  %v1511_v37 = vld [vmem:[%s1467_s9 + $0x28] sm:$0xff] (!%p350_p13)  ;;  %v453_v38 = vsel (!%p350_p13), %vm413_vm0, %v1508_v36, 0.0 }
  0x2f   : > { %v423_v31 = vsel (!%p350_p13), %vm413_vm0, %v1491_v29, 0.0  ;;  %v426_v35 = vsel (!%p350_p13), %vm413_vm0, %v1501_v33, 0.0  ;;  %v429_v39 = vsel (!%p350_p13), %vm413_vm0, %v1511_v37, 0.0  ;;  %v1518_v40 = vld [vmem:[%s1474_s10 + $0x30] sm:$0xff] (!%p350_p13)  ;;  %v1528_v44 = vld [vmem:[%s1474_s10 + $0x38] sm:$0xff] (!%p350_p13)  ;;  %s919_s8 = sshll.u32 (!%p350_p13), %s1712_s25, 4  ;;  %s1725_s10 = scalar_lea.hbm (!%p350_p13), %s1785_s5, %s1069_s27  ;;  %s1727_s8 = int_to_ptr.vmem [resolvable:$true] %s919_s8 }
  0x30   : > { %v1521_v41 = vld [vmem:[%s1467_s9 + $0x30] sm:$0xff]  ;;  %v456_v42 = vsel %vm413_vm0, %v1518_v40, 0.0  ;;  %v1531_v45 = vld [vmem:[%s1467_s9 + $0x38] sm:$0xff]  ;;  %v459_v46 = vsel %vm413_vm0, %v1528_v44, 0.0  ;;  %s1271_s11 = scalar_lea.vmem %s1727_s8, 1024  ;;  %s1351_s12 = smov [#allocation4]  }
  0x31   : > { %442 = vadd.xlane.f32.xlu1 %v441_v22  ;;  %439 = vadd.xlane.f32.xlu0 %v438_v23  ;;  %v432_v43 = vsel %vm413_vm0, %v1521_v41, 0.0  ;;  %v435_v47 = vsel %vm413_vm0, %v1531_v45, 0.0  ;;  %p1272_p0 = scmp.ne.s32.totalorder %s1727_s8, %s1271_s11  ;;  %s1275_s13 = sshll.u32 %s1351_s12, 4  ;;  %s1276_s13 = int_to_ptr.vmem [resolvable:$false] %s1275_s13 }
  0x32   : > { %s1277_s14 = scalar_lea.vmem %s1276_s13, 2048  ;;  %p1278_p3 = scmp.lt.s32.totalorder %s1727_s8, %s1276_s13 }
  0x33   : > { %p1273_p1 = pnand %p1272_p0, %p1427_p5  ;;  %p1279_p4 = scmp.lt.s32.totalorder %s1277_s14, %s1271_s11 }
  0x35   : > { %445 = vadd.xlane.f32.xlu1 %v444_v26  ;;  %421 = vadd.xlane.f32.xlu0 %v420_v27  ;;  %p1274_p2 = pneg %p1273_p1  ;;  %p1280_p6 = por %p1279_p4, %p1278_p3 }
  0x37   : > { %p1281_p7 = pnand %p1280_p6, %p1274_p2 }
  0x39   : > { %448 = vadd.xlane.f32.xlu1 %v447_v30  ;;  %424 = vadd.xlane.f32.xlu0 %v423_v31 }
  0x3d   : > { %451 = vadd.xlane.f32.xlu1 %v450_v34  ;;  %427 = vadd.xlane.f32.xlu0 %v426_v35 }
  0x41   : > { %454 = vadd.xlane.f32.xlu1 %v453_v38  ;;  %430 = vadd.xlane.f32.xlu0 %v429_v39 }
  0x45   : > { %457 = vadd.xlane.f32.xlu1 %v456_v42  ;;  %433 = vadd.xlane.f32.xlu0 %v432_v43 }
  0x49   : > { %460 = vadd.xlane.f32.xlu1 %v459_v46  ;;  %436 = vadd.xlane.f32.xlu0 %v435_v47 }
  0xba   : > { %v419_v48 = vpop.xlane.xlu1 %418  ;;  %v416_v49 = vpop.xlane.xlu0 %415 }
  0xbe   : > { %v443_v50 = vpop.xlane.xlu1 %442  ;;  %v440_v51 = vpop.xlane.xlu0 %439 }
  0xbf   : > { %v463_v52 = vadd.f32 %v443_v50, %v419_v48  ;;  %v462_v53 = vadd.f32 %v440_v51, %v416_v49 }
  0xc1   : > { %v471_v54 = vmul.f32 0.0078125, %v463_v52  ;;  %v470_v55 = vmul.f32 0.0078125, %v462_v53 }
  0xc2   : > { %v446_v56 = vpop.xlane.xlu1 %445  ;;  %v422_v57 = vpop.xlane.xlu0 %421 }
  0xc3   : > { %v1537_v58 = vsub.f32 %v398_v16, %v471_v54  ;;  %v1539_v59 = vsub.f32 %v406_v20, %v471_v54  ;;  %v1541_v60 = vsub.f32 %v397_v17, %v470_v55  ;;  %v1543_v61 = vsub.f32 %v405_v21, %v470_v55 }
  0xc4   : > { %v464_v62 = vadd.f32 %v446_v56, %v422_v57 }
  0xc5   : > { %v526_v63 = vmul.f32 %v1543_v61, %v1543_v61  ;;  %v494_v0 = vmul.f32 %v1541_v60, %v1541_v60  ;;  %v527_v4 = vmul.f32 %v1539_v59, %v1539_v59  ;;  %v495_v8 = vmul.f32 %v1537_v58, %v1537_v58 }
  0xc6   : > { %v472_v1 = vmul.f32 0.0078125, %v464_v62  ;;  %v449_v2 = vpop.xlane.xlu1 %448  ;;  %v425_v3 = vpop.xlane.xlu0 %424 }
  0xc7   : > { %v534_v5 = vsel %vm413_vm0, %v526_v63, 0.0  ;;  %v502_v6 = vsel %vm413_vm0, %v494_v0, 0.0  ;;  %v465_v7 = vadd.f32 %v449_v2, %v425_v3  ;;  %v537_v12 = vsel %vm413_vm0, %v527_v4, 0.0  ;;  %v614_v0 = vld [vmem:[%s1783_s3] sm:$0xff] }
  0xc8   : > { %v1555_v9 = vsub.f32 %v399_v25, %v472_v1  ;;  %v1558_v10 = vsub.f32 %v1481_v24, %v472_v1  ;;  %535 = vadd.xlane.f32.xlu1 %v534_v5  ;;  %503 = vadd.xlane.f32.xlu0 %v502_v6  ;;  %v505_v19 = vsel %vm413_vm0, %v495_v8, 0.0  ;;  %v615_v1 = vld [vmem:[%s1783_s3 + $0x8] sm:$0xff]  ;;  %v606_v2 = vld [vmem:[%s1782_s2] sm:$0xff]  ;;  %v616_v8 = vld [vmem:[%s1783_s3 + $0x10] sm:$0xff] }
  0xc9   : > { %v473_v11 = vmul.f32 0.0078125, %v465_v7  ;;  %v1158_v3 = vpack.c.bf16 %v615_v1, %v614_v0 }
  0xca   : > { %v452_v13 = vpop.xlane.xlu1 %451  ;;  %v428_v14 = vpop.xlane.xlu0 %427  ;;  %v528_v15 = vmul.f32 %v1558_v10, %v1558_v10  ;;  %v496_v16 = vmul.f32 %v1555_v9, %v1555_v9 }
  0xcb   : > { %v1566_v17 = vsub.f32 %v1491_v29, %v473_v11  ;;  %v1569_v18 = vsub.f32 %v1488_v28, %v473_v11  ;;  %v466_v20 = vadd.f32 %v452_v13, %v428_v14  ;;  %1159 = vmatprep.subr.bf16.mxu1 %v1158_v3  ;;  %v617_v11 = vld [vmem:[%s1783_s3 + $0x18] sm:$0xff] }
  0xcc   : > { %538 = vadd.xlane.f32.xlu1 %v537_v12  ;;  %506 = vadd.xlane.f32.xlu0 %v505_v19  ;;  %v540_v21 = vsel %vm413_vm0, %v528_v15, 0.0  ;;  %v508_v23 = vsel %vm413_vm0, %v496_v16, 0.0  ;;  %v608_v12 = vld [vmem:[%s1782_s2 + $0x10] sm:$0xff]  ;;  %v1162_v13 = vpack.c.bf16 %v617_v11, %v616_v8  ;;  %v609_v14 = vld [vmem:[%s1782_s2 + $0x18] sm:$0xff] }
  0xcd   : > { %v474_v22 = vmul.f32 0.0078125, %v466_v20  ;;  %v529_v24 = vmul.f32 %v1569_v18, %v1569_v18  ;;  %v497_v25 = vmul.f32 %v1566_v17, %v1566_v17  ;;  %1161 = vmatpush3.bf16.msra.mxu1 %v1158_v3  ;;  %v1178_v19 = vpack.c.bf16 %v609_v14, %v608_v12  ;;  %v618_v20 = vld [vmem:[%s1783_s3 + $0x20] sm:$0xff] }
  0xce   : > { %v455_v26 = vpop.xlane.xlu1 %454  ;;  %v431_v27 = vpop.xlane.xlu0 %430  ;;  %1163 = vmatprep.subr.bf16.mxu1 %v1162_v13 }
  0xcf   : > { %v1579_v28 = vsub.f32 %v1501_v33, %v474_v22  ;;  %v1582_v29 = vsub.f32 %v1498_v32, %v474_v22  ;;  %v467_v30 = vadd.f32 %v455_v26, %v431_v27  ;;  %v543_v31 = vsel %vm413_vm0, %v529_v24, 0.0  ;;  %v610_v22 = vld [vmem:[%s1782_s2 + $0x20] sm:$0xff]  ;;  %v611_v24 = vld [vmem:[%s1782_s2 + $0x28] sm:$0xff]  ;;  %v620_v26 = vld [vmem:[%s1783_s3 + $0x30] sm:$0xff] }
  0xd0   : > { %541 = vadd.xlane.f32.xlu1 %v540_v21  ;;  %509 = vadd.xlane.f32.xlu0 %v508_v23  ;;  %v511_v35 = vsel %vm413_vm0, %v497_v25, 0.0  ;;  %v619_v21 = vld [vmem:[%s1783_s3 + $0x28] sm:$0xff]  ;;  %v1182_v25 = vpack.c.bf16 %v611_v24, %v610_v22  ;;  %v621_v27 = vld [vmem:[%s1783_s3 + $0x38] sm:$0xff] }
  0xd1   : > { %v475_v34 = vmul.f32 0.0078125, %v467_v30  ;;  %v530_v38 = vmul.f32 %v1582_v29, %v1582_v29  ;;  %v498_v39 = vmul.f32 %v1579_v28, %v1579_v28  ;;  %1165 = vmatpush3.bf16.msra.mxu1 %v1162_v13  ;;  %v1166_v23 = vpack.c.bf16 %v619_v21, %v618_v20  ;;  %v612_v30 = vld [vmem:[%s1782_s2 + $0x30] sm:$0xff] }
  0xd2   : > { %v458_v42 = vpop.xlane.xlu1 %457  ;;  %v434_v33 = vpop.xlane.xlu0 %433 }
  0xd3   : > { %v1591_v43 = vsub.f32 %v1511_v37, %v475_v34  ;;  %v1594_v32 = vsub.f32 %v1508_v36, %v475_v34  ;;  %v468_v46 = vadd.f32 %v458_v42, %v434_v33  ;;  %v546_v47 = vsel %vm413_vm0, %v530_v38, 0.0  ;;  %1167 = vmatprep.subr.bf16.mxu1 %v1166_v23  ;;  %v613_v34 = vld [vmem:[%s1782_s2 + $0x38] sm:$0xff] }
  0xd4   : > { %544 = vadd.xlane.f32.xlu1 %v543_v31  ;;  %512 = vadd.xlane.f32.xlu0 %v511_v35  ;;  %v514_v49 = vsel %vm413_vm0, %v498_v39, 0.0  ;;  %v1170_v31 = vpack.c.bf16 %v621_v27, %v620_v26  ;;  %v1186_v35 = vpack.c.bf16 %v613_v34, %v612_v30 }
  0xd5   : > { %v476_v48 = vmul.f32 0.0078125, %v468_v46  ;;  %v531_v50 = vmul.f32 %v1594_v32, %v1594_v32  ;;  %v499_v51 = vmul.f32 %v1591_v43, %v1591_v43  ;;  %1169 = vmatpush3.bf16.msra.mxu1 %v1166_v23 }
  0xd6   : > { %v461_v52 = vpop.xlane.xlu1 %460  ;;  %v437_v37 = vpop.xlane.xlu0 %436  ;;  %1171 = vmatprep.subr.bf16.mxu1 %v1170_v31 }
  0xd7   : > { %v1603_v53 = vsub.f32 %v1521_v41, %v476_v48  ;;  %v1606_v36 = vsub.f32 %v1518_v40, %v476_v48  ;;  %v469_v54 = vadd.f32 %v461_v52, %v437_v37  ;;  %v549_v55 = vsel %vm413_vm0, %v531_v50, 0.0 }
  0xd8   : > { %547 = vadd.xlane.f32.xlu1 %v546_v47  ;;  %515 = vadd.xlane.f32.xlu0 %v514_v49  ;;  %v517_v57 = vsel %vm413_vm0, %v499_v51, 0.0 }
  0xd9   : > { %v477_v56 = vmul.f32 0.0078125, %v469_v54  ;;  %v532_v62 = vmul.f32 %v1606_v36, %v1606_v36  ;;  %v500_v63 = vmul.f32 %v1603_v53, %v1603_v53  ;;  %1173 = vmatpush3.bf16.msra.mxu1 %v1170_v31 }
  0xdb   : > { %v1615_v41 = vsub.f32 %v1531_v45, %v477_v56  ;;  %v1618_v40 = vsub.f32 %v1528_v44, %v477_v56  ;;  %v552_v45 = vsel %vm413_vm0, %v532_v62, 0.0  ;;  %v607_v44 = vld [vmem:[%s1782_s2 + $0x8] sm:$0xff]  ;;  %v520_v4 = vsel %vm413_vm0, %v500_v63, 0.0 }
  0xdc   : > { %550 = vadd.xlane.f32.xlu1 %v549_v55  ;;  %518 = vadd.xlane.f32.xlu0 %v517_v57  ;;  %v1174_v7 = vpack.c.bf16 %v607_v44, %v606_v2 }
  0xdd   : > { %v533_v5 = vmul.f32 %v1618_v40, %v1618_v40  ;;  %v501_v6 = vmul.f32 %v1615_v41, %v1615_v41 }
  0xde   : > { %1175 = vmatprep.subr.bf16.mxu0 %v1174_v7 }
  0xdf   : > { %v555_v15 = vsel %vm413_vm0, %v533_v5, 0.0  ;;  %v523_v16 = vsel %vm413_vm0, %v501_v6, 0.0  ;;  %1177 = vmatpush3.bf16.msra.mxu0 %v1174_v7 }
  0xe0   : > { %553 = vadd.xlane.f32.xlu1 %v552_v45  ;;  %521 = vadd.xlane.f32.xlu0 %v520_v4 }
  0xe1   : > { %1179 = vmatprep.subr.bf16.mxu0 %v1178_v19 }
  0xe3   : > { %1181 = vmatpush3.bf16.msra.mxu0 %v1178_v19 }
  0xe4   : > { %556 = vadd.xlane.f32.xlu1 %v555_v15  ;;  %524 = vadd.xlane.f32.xlu0 %v523_v16 }
  0xe5   : > { %1183 = vmatprep.subr.bf16.mxu0 %v1182_v25 }
  0xe7   : > { %1185 = vmatpush3.bf16.msra.mxu0 %v1182_v25 }
  0xe8   : > { %1187 = vmatprep.subr.bf16.mxu0 %v1186_v35 }
  0xeb   : > { %1189 = vmatpush3.bf16.msra.mxu0 %v1186_v35 }
 0x155   : > { %v536_v38 = vpop.xlane.xlu1 %535  ;;  %v504_v39 = vpop.xlane.xlu0 %503 }
 0x156   : > { %v558_v42 = vadd.f32 %v536_v38, %v504_v39 }
 0x158   : > { %v566_v33 = vmul.f32 0.0078125, %v558_v42 }
 0x159   : > { %v539_v46 = vpop.xlane.xlu1 %538  ;;  %v507_v47 = vpop.xlane.xlu0 %506 }
 0x15a   : > { %v574_v48 = vadd.f32 1e-05, %v566_v33  ;;  %v559_v49 = vadd.f32 %v539_v46, %v507_v47 }
 0x15c   : > { %1255 = vrsqrt.f32 %v574_v48  ;;  %v567_v50 = vmul.f32 0.0078125, %v559_v49 }
 0x15d   : > { %v542_v51 = vpop.xlane.xlu1 %541  ;;  %v510_v52 = vpop.xlane.xlu0 %509 }
 0x15e   : > { %v575_v37 = vadd.f32 1e-05, %v567_v50  ;;  %v560_v54 = vadd.f32 %v542_v51, %v510_v52 }
 0x160   : > { %1257 = vrsqrt.f32 %v575_v37  ;;  %v568_v55 = vmul.f32 0.0078125, %v560_v54 }
 0x161   : > { %v545_v56 = vpop.xlane.xlu1 %544  ;;  %v513_v57 = vpop.xlane.xlu0 %512 }
 0x162   : > { %v576_v62 = vadd.f32 1e-05, %v568_v55  ;;  %v561_v63 = vadd.f32 %v545_v56, %v513_v57 }
 0x164   : > { %1259 = vrsqrt.f32 %v576_v62  ;;  %v569_v0 = vmul.f32 0.0078125, %v561_v63 }
 0x165   : > { %v548_v1 = vpop.xlane.xlu1 %547  ;;  %v516_v2 = vpop.xlane.xlu0 %515 }
 0x166   : > { %v1256_v45 = vpop.eup %1255  ;;  %v577_v3 = vadd.f32 1e-05, %v569_v0  ;;  %v562_v44 = vadd.f32 %v548_v1, %v516_v2 }
 0x167   : > { %v598_v4 = vmul.f32 %v1256_v45, %v1543_v61  ;;  %v590_v5 = vmul.f32 %v1256_v45, %v1541_v60 }
 0x168   : > { %1261 = vrsqrt.f32 %v577_v3  ;;  %v570_v6 = vmul.f32 0.0078125, %v562_v44 }
 0x169   : > { %v551_v7 = vpop.xlane.xlu1 %550  ;;  %1118 = vmatprep.mubr.msk.f32.mxu1 %vm413_vm0, %v598_v4  ;;  %1146 = vmatprep.mubr.msk.f32.mxu0 %vm413_vm0, %v590_v5  ;;  %v519_v8 = vpop.xlane.xlu0 %518 }
 0x16a   : > { %v1258_v11 = vpop.eup %1257  ;;  %v578_v12 = vadd.f32 1e-05, %v570_v6  ;;  %v563_v13 = vadd.f32 %v551_v7, %v519_v8 }
 0x16b   : > { %v599_v14 = vmul.f32 %v1258_v11, %v1539_v59  ;;  %v591_v15 = vmul.f32 %v1258_v11, %v1537_v58 }
 0x16c   : > { %1263 = vrsqrt.f32 %v578_v12  ;;  %v571_v16 = vmul.f32 0.0078125, %v563_v13 }
 0x16d   : > { %v554_v61 = vpop.xlane.xlu1 %553  ;;  %1119 = vmatmul.mubr.msk.f32.vlgmr.msra.gmra.mrb[0].mxu1 %vm413_vm0, %v599_v14  ;;  %1147 = vmatmul.mubr.msk.f32.vlgmr.msra.gmra.mrb[0].mxu0 %vm413_vm0, %v591_v15  ;;  %v522_v60 = vpop.xlane.xlu0 %521 }
 0x16e   : > { %v1260_v19 = vpop.eup %1259  ;;  %v579_v20 = vadd.f32 1e-05, %v571_v16  ;;  %v564_v21 = vadd.f32 %v554_v61, %v522_v60 }
 0x16f   : > { %v600_v22 = vmul.f32 %v1260_v19, %v1558_v10  ;;  %v592_v23 = vmul.f32 %v1260_v19, %v1555_v9 }
 0x170   : > { %1265 = vrsqrt.f32 %v579_v20  ;;  %v572_v24 = vmul.f32 0.0078125, %v564_v21 }
 0x171   : > { %v557_v59 = vpop.xlane.xlu1 %556  ;;  %1121 = vmatprep.mubr.msk.f32.mxu1 %vm413_vm0, %v600_v22  ;;  %1149 = vmatprep.mubr.msk.f32.mxu0 %vm413_vm0, %v592_v23  ;;  %v525_v58 = vpop.xlane.xlu0 %524 }
 0x172   : > { %v1262_v25 = vpop.eup %1261  ;;  %v580_v26 = vadd.f32 1e-05, %v572_v24  ;;  %v565_v27 = vadd.f32 %v557_v59, %v525_v58 }
 0x173   : > { %v601_v30 = vmul.f32 %v1262_v25, %v1569_v18  ;;  %v593_v31 = vmul.f32 %v1262_v25, %v1566_v17 }
 0x174   : > { %1267 = vrsqrt.f32 %v580_v26  ;;  %v573_v34 = vmul.f32 0.0078125, %v565_v27 }
 0x175   : > { %1122 = vmatmul.mubr.msk.f32.gmra.mrb[2].mxu1 %vm413_vm0, %v601_v30  ;;  %1150 = vmatmul.mubr.msk.f32.gmra.mrb[2].mxu0 %vm413_vm0, %v593_v31 }
 0x176   : > { %v1264_v9 = vpop.eup %1263  ;;  %v581_v10 = vadd.f32 1e-05, %v573_v34 }
 0x177   : > { %v602_v35 = vmul.f32 %v1264_v9, %v1582_v29  ;;  %v594_v38 = vmul.f32 %v1264_v9, %v1579_v28 }
 0x178   : > { %1269 = vrsqrt.f32 %v581_v10 }
 0x179   : > { %1124 = vmatprep.mubr.msk.f32.mxu1 %vm413_vm0, %v602_v35  ;;  %1152 = vmatprep.mubr.msk.f32.mxu0 %vm413_vm0, %v594_v38 }
 0x17a   : > { %v1266_v18 = vpop.eup %1265 }
 0x17b   : > { %v603_v17 = vmul.f32 %v1266_v18, %v1594_v32  ;;  %v595_v39 = vmul.f32 %v1266_v18, %v1591_v43 }
 0x17d   : > { %1125 = vmatmul.mubr.msk.f32.gmra.mrb[4].mxu1 %vm413_vm0, %v603_v17  ;;  %1153 = vmatmul.mubr.msk.f32.gmra.mrb[4].mxu0 %vm413_vm0, %v595_v39 }
 0x17e   : > { %v1268_v42 = vpop.eup %1267 }
 0x17f   : > { %v604_v33 = vmul.f32 %v1268_v42, %v1606_v36  ;;  %v596_v29 = vmul.f32 %v1268_v42, %v1603_v53  ;;  %v1061_v53 = vld [vmem:[%s1784_s4] ss:$0 sm:$0xff] }
 0x181   : > { %1127 = vmatprep.mubr.msk.f32.mxu1 %vm413_vm0, %v604_v33  ;;  %1155 = vmatprep.mubr.msk.f32.mxu0 %vm413_vm0, %v596_v29 }
 0x182   : > { %v1270_v28 = vpop.eup %1269 }
 0x183   : > { %v605_v46 = vmul.f32 %v1270_v28, %v1618_v40  ;;  %v597_v32 = vmul.f32 %v1270_v28, %v1615_v41 }
 0x185   : > { %1128 = vmatmul.mubr.msk.f32.gmra.mrb[6].mxu1 %vm413_vm0, %v605_v46  ;;  %1156 = vmatmul.mubr.msk.f32.gmra.mrb[6].mxu0 %vm413_vm0, %v597_v32 }
 0x240   : > { %v1120_v43 = vpop.f32.mrb[0].mxu1  ;;  %v1148_v47 = vpop.f32.mrb[0].mxu0 }
 0x241   : > { %v847_v36 = vadd.f32 %v1148_v47, %v1120_v43  ;;  %v712_v48 = vpop.f32.mrb[1].mxu1  ;;  %v841_v49 = vpop.f32.mrb[1].mxu0 }
 0x242   : > { %v842_v50 = vadd.f32 %v841_v49, %v712_v48 }
 0x243   : > { %v888_v51 = vadd.f32 %v1061_v53, %v847_v36 }
 0x244   : > { %v887_v52 = vadd.f32 %v1061_v53, %v842_v50 }
 0x245   : > { %896 = vst [vmem:[%s1712_s25 + $0x8] sm:$0xff] %v888_v51 }
 0x246   : > { %895 = vst [vmem:[%s1712_s25] sm:$0xff] %v887_v52 }
 0x248   : > { %v1123_v41 = vpop.f32.mrb[2].mxu1  ;;  %v1151_v40 = vpop.f32.mrb[2].mxu0 }
 0x249   : > { %v857_v37 = vadd.f32 %v1151_v40, %v1123_v41  ;;  %v722_v54 = vpop.f32.mrb[3].mxu1  ;;  %v851_v55 = vpop.f32.mrb[3].mxu0 }
 0x24a   : > { %v852_v56 = vadd.f32 %v851_v55, %v722_v54 }
 0x24b   : > { %v890_v57 = vadd.f32 %v1061_v53, %v857_v37 }
 0x24c   : > { %v889_v62 = vadd.f32 %v1061_v53, %v852_v56 }
 0x24d   : > { %898 = vst [vmem:[%s1712_s25 + $0x18] sm:$0xff] %v890_v57 }
 0x24e   : > { %897 = vst [vmem:[%s1712_s25 + $0x10] sm:$0xff] %v889_v62 }
 0x250   : > { %v1126_v63 = vpop.f32.mrb[4].mxu1  ;;  %v1154_v0 = vpop.f32.mrb[4].mxu0 }
 0x251   : > { %v867_v1 = vadd.f32 %v1154_v0, %v1126_v63  ;;  %v732_v2 = vpop.f32.mrb[5].mxu1  ;;  %v861_v45 = vpop.f32.mrb[5].mxu0 }
 0x252   : > { %v862_v3 = vadd.f32 %v861_v45, %v732_v2 }
 0x253   : > { %v892_v44 = vadd.f32 %v1061_v53, %v867_v1 }
 0x254   : > { %v891_v4 = vadd.f32 %v1061_v53, %v862_v3 }
 0x255   : > { %900 = vst [vmem:[%s1712_s25 + $0x28] sm:$0xff] %v892_v44 }
 0x256   : > { %899 = vst [vmem:[%s1712_s25 + $0x20] sm:$0xff] %v891_v4 }
 0x258   : > { %v1129_v5 = vpop.f32.mrb[6].mxu1  ;;  %v1157_v6 = vpop.f32.mrb[6].mxu0 }
 0x259   : > { %v877_v7 = vadd.f32 %v1157_v6, %v1129_v5  ;;  %v742_v8 = vpop.f32.mrb[7].mxu1  ;;  %v871_v11 = vpop.f32.mrb[7].mxu0 }
 0x25a   : > { %v872_v12 = vadd.f32 %v871_v11, %v742_v8 }
 0x25b   : > { %v894_v13 = vadd.f32 %v1061_v53, %v877_v7 }
 0x25c   : > { %v893_v14 = vadd.f32 %v1061_v53, %v872_v12 }
 0x25d   : > { %902 = vst [vmem:[%s1712_s25 + $0x38] sm:$0xff] %v894_v13 }
 0x25e   : > { %901 = vst [vmem:[%s1712_s25 + $0x30] sm:$0xff] %v893_v14 }
 0x25f   : > { %1284 = shalt.err (!%p1281_p7)
}
 0x260   : > { %s1285_s28 = scalar_lea.hbm %s1725_s10, 1024  ;;  %s1289_s17 = scalar_lea.hbm %s1785_s5, 2048 }
 0x261   : > { %p1286_p8 = scmp.ne.s32.totalorder %s1725_s10, %s1285_s28  ;;  %p1290_p13 = scmp.lt.u32.totalorder %s1725_s10, %s1785_s5 }
 0x262   : > { %p1291_p0 = scmp.lt.u32.totalorder %s1289_s17, %s1285_s28  ;;  %p1293_p2 = scmp.lt.u32.totalorder %s1285_s28, %s1725_s10 }
 0x263   : > { %p1287_p11 = pnand %p1286_p8, %p1427_p5 }
 0x264   : > { %p1292_p1 = por %p1291_p0, %p1290_p13 }
 0x265   : > { %p1288_p12 = pneg %p1287_p11 }
 0x266   : > { %p1294_p3 = por %p1293_p2, %p1292_p1 }
 0x268   : > { %p1295_p4 = pnand %p1294_p3, %p1288_p12 }
 0x26a   : > { %1298 = shalt.err (!%p1295_p4)
}
 0x26b   : > { %s1352_s27 = smov 128   ;;  %s1353_s30 = smov 8  }
 0x26c   : > { %1198 = dma.vmem_to_hbm [thread:$0]  (%p1427_p5), %s1727_s8, 1024, %s1725_s10, %s1733_s21, %s1352_s27, %s1352_s27, %s1353_s30  }
 0x26d PF: > { %s934_s9 = sand.u32 1, %s1329_s18   ;;  %p1201_p6 = pnand %p1026_p10, %p1438_p9 }
 0x26e   : > { %s935_s11 = scalar_lea.sflag [#allocation5], %s934_s9 }
 0x26f   : > { %1324 = dma.done.wait (!%p1201_p6), %s935_s11, 1024  }
 0x270   : > { %1326 = vsyncadd (!%p1201_p6), %s935_s11, 4294966272  ;;  %s18_s23 = sadd.s32 1, %s1349_s23   ;;  %s1789_s18 = smov %s1333_s19 }
 0x271   : > { %p15_p7 = scmp.ge.s32.totalorder %s18_s23, 4   ;;  %s1790_s19 = smov %s1337_s20 }
 0x272   : > { %s1791_s20 = smov %s1436_s6  ;;  %s1792_s21 = smov %s1345_s22 }
 0x273   : > { %s1793_s22 = smov %s1795_s26  ;;  %17 = sbr.rel (!%p15_p7) target bundleno = 4 (0x4), region = 164 }
 0x27a   :  { %940 = vsyncpa [#allocation5], 1 }
 0x27b   :  { %942 = vsyncpa [#allocation5 + $0x1], 1 }

</bundles_post_ra>
